<compile_context>
chip_gen: v7x
topology: tpu7x:2x2x1
jax: 0.10.0
libtpu: 0.0.40
codegen_flags: <defaults>
</compile_context>

<pallas_src>
import functools

import jax
import jax.numpy as jnp
from jax import lax
from jax.experimental import pallas as pl
from jax.experimental.pallas import tpu as pltpu


def _round_up(x: int, m: int) -> int:
    return ((x + m - 1) // m) * m


def _pick_token_tile(T: int, token_tile: int) -> int:
    """Choose the number of patch rows processed per grid step."""
    if T <= 256:
        return T                      # single full block (always a legal block shape)
    tile = min(int(token_tile), T)
    if tile >= 256:
        tile = (tile // 256) * 256    # 256-aligned: matches MXU M and bf16 packing
    else:
        tile = max(8, (tile // 8) * 8)
    if tile >= T:
        # make sure there are >= 2 grid steps so both v7x TensorCores get work
        tile = _round_up((T + 1) // 2, 8)
    return tile


def _patch_embed_kernel(p_ref, w_ref, b_ref, o_ref):
    """One tile of tokens: out = patches @ W + b.

    p_ref: [tile, Dp]  flattened patches (tokens on sublanes, Dp on lanes), bf16
    w_ref: [Dp, Ep]    weight, host-transposed once (resident), bf16
    b_ref: [1, Ep]     bias, f32 (resident)
    o_ref: [tile, Ep]  embeddings (Ep lane-dense)
    """
    acc = jnp.dot(p_ref[...], w_ref[...], preferred_element_type=jnp.float32)
    acc = acc + b_ref[...].astype(jnp.float32)
    o_ref[...] = acc.astype(o_ref.dtype)


def patch_embed(x, weight, bias, *, patch_size, img_size=None,
                token_tile=512, compute_dtype=jnp.bfloat16):
    """Pallas implementation of PatchEmbed.forward.

    Args:
      x:       [B, C, H, W] image tensor (f32 or bf16).
      weight:  [E, C, ph, pw] conv weight (PyTorch Conv2d OIHW layout).
      bias:    [E] conv bias.
      patch_size: int or (ph, pw).
      img_size:   optional int or (H, W); if the input spatial size differs,
                  it is bilinearly resized (wrapper-side, like F.interpolate).
      token_tile: target number of token rows per grid step (256-aligned).
      compute_dtype: matmul operand dtype (accumulation is always f32).

    Returns:
      [B, num_patches, E] patch embeddings in x.dtype.
    """
    if isinstance(patch_size, int):
        patch_size = (patch_size, patch_size)
    ph, pw = patch_size

    B, C, H, W = x.shape
    if img_size is None:
        img_size = (H, W)
    elif isinstance(img_size, int):
        img_size = (img_size, img_size)
    # Truncate to a multiple of the patch size (mirrors the module's warning path).
    img_size = (img_size[0] // ph * ph, img_size[1] // pw * pw)

    if (H, W) != img_size:
        # Wrapper-side bilinear resize (matches F.interpolate align_corners=False).
        x = jax.image.resize(x, (B, C, img_size[0], img_size[1]), method="bilinear")
        H, W = img_size

    gH, gW = H // ph, W // pw
    num_patches = gH * gW
    E = weight.shape[0]
    D = C * ph * pw
    T = B * num_patches
    out_dtype = x.dtype

    # Lane-aligned (padded) contraction / embedding dims.
    Dp = _round_up(D, 128)
    Ep = _round_up(E, 128)

    # --- im2col (single XLA relayout pass; cast first so it writes bf16) ----
    xc = x.astype(compute_dtype)
    patches = xc.reshape(B, C, gH, ph, gW, pw)
    patches = patches.transpose(0, 2, 4, 1, 3, 5).reshape(T, D)   # (b, r, gw) x (c, i, j)
    if Dp != D:
        patches = jnp.pad(patches, ((0, 0), (0, Dp - D)))

    # --- weight / bias: one-time host-side relayout (tiny tensors) ----------
    w_de = weight.reshape(E, D).T                                  # [D, E]
    if (Dp, Ep) != (D, E):
        w_de = jnp.pad(w_de, ((0, Dp - D), (0, Ep - E)))
    w_de = w_de.astype(compute_dtype)
    b2d = bias.reshape(1, E).astype(jnp.float32)
    if Ep != E:
        b2d = jnp.pad(b2d, ((0, 0), (0, Ep - E)))

    # --- tiling / VMEM budget -----------------------------------------------
    tile = _pick_token_tile(T, token_tile)
    grid = (pl.cdiv(T, tile),)

    c_isz = jnp.dtype(compute_dtype).itemsize
    o_isz = jnp.dtype(out_dtype).itemsize
    need = (2 * tile * Dp * c_isz      # double-buffered streamed patches blocks
            + 2 * tile * Ep * o_isz    # double-buffered output blocks
            + Dp * Ep * c_isz          # resident weight
            + Ep * 4)                  # resident bias
    # Budget against v7x's 64 MiB physical VMEM (v5e/v6e have 128 MiB).
    # NOTE: extreme embed dims (E >~ 4K at f32 output) would want a second
    # grid axis over E; typical ViT sizes fit comfortably.
    vmem_limit = int(min(max(2 * need, 32 * 1024 * 1024), 64 * 1024 * 1024))

    out = pl.pallas_call(
        _patch_embed_kernel,
        out_shape=jax.ShapeDtypeStruct((T, Ep), out_dtype),
        grid_spec=pl.GridSpec(
            grid=grid,
            in_specs=[
                pl.BlockSpec((tile, Dp), lambda i: (i, 0)),   # streamed patches
                pl.BlockSpec((Dp, Ep), lambda i: (0, 0)),     # resident weight
                pl.BlockSpec((1, Ep), lambda i: (0, 0)),      # resident bias
            ],
            out_specs=pl.BlockSpec((tile, Ep), lambda i: (i, 0)),
        ),
        compiler_params=pltpu.CompilerParams(
            dimension_semantics=("parallel",),
            vmem_limit_bytes=vmem_limit,
        ),
    )(patches, w_de, b2d)

    if Ep != E:
        out = out[:, :E]
    return out.reshape(B, num_patches, E)


def _reference(x, weight, bias, patch_size):
    """Pure-JAX reference mirroring the PyTorch forward (strided conv)."""
    ph, pw = patch_size
    y = lax.conv_general_dilated(
        x, weight,
        window_strides=(ph, pw),
        padding="VALID",
        dimension_numbers=("NCHW", "OIHW", "NCHW"),
    )
    y = y + bias[None, :, None, None]
    B, E, gH, gW = y.shape
    return y.reshape(B, E, gH * gW).transpose(0, 2, 1)   # [B, num_patches, E]


if __name__ == "__main__":
    # Small shapes consistent with the module: batch=2, channels=4,
    # img_size=16, patch_size=4, embed_dim=32 -> 16 patches of dim 32.
    B, C, IMG, P, EMB = 2, 4, 16, 4, 32

    key = jax.random.PRNGKey(0)
    kx, kw = jax.random.split(key, 2)

    x = jax.random.normal(kx, (B, C, IMG, IMG), jnp.float32)
    # Module init: weight ~ N(0, 0.02), bias = 0.
    weight = 0.02 * jax.random.normal(kw, (EMB, C, P, P), jnp.float32)
    bias = jnp.zeros((EMB,), jnp.float32)

    fn = jax.jit(functools.partial(patch_embed, patch_size=P, img_size=IMG))
    out = fn(x, weight, bias)
    out = jax.block_until_ready(out)

    assert out.shape == (B, (IMG // P) * (IMG // P), EMB), out.shape

    ref = _reference(x, weight, bias, (P, P))
    max_err = float(jnp.max(jnp.abs(out - ref)))
    # bf16 operands with f32 accumulation vs f32 reference.
    assert max_err < 2e-2, max_err

    print("KERNEL_OK")
</pallas_src>

<mosaic_0001>
module attributes {stable_mosaic.version = 11 : i64} {
  func.func @_patch_embed_kernel(%arg0: i32, %arg1: memref<32x128xbf16, #tpu.memory_space<vmem>>, %arg2: memref<128x128xbf16, #tpu.memory_space<vmem>>, %arg3: memref<1x128xf32, #tpu.memory_space<vmem>>, %arg4: memref<32x128xf32, #tpu.memory_space<vmem>>) attributes {dimension_semantics = [#tpu.dimension_semantics<parallel>], iteration_bounds = array<i64: 1>, scalar_prefetch = 0 : i64, scratch_operands = 0 : i64, tpu.core_type = #tpu.core_type<tc>, window_params = [{transform_indices = @transform_0, window_bounds = array<i64: 32, 128>}, {pipeline_mode = #tpu.pipeline_mode<synchronous>, transform_indices = @transform_1, window_bounds = array<i64: 128, 128>}, {pipeline_mode = #tpu.pipeline_mode<synchronous>, transform_indices = @transform_2, window_bounds = array<i64: 1, 128>}, {transform_indices = @transform_3, window_bounds = array<i64: 32, 128>}]} {
    %c0 = arith.constant 0 : index
    %c0_0 = arith.constant 0 : index
    %0 = vector.load %arg1[%c0, %c0_0] : memref<32x128xbf16, #tpu.memory_space<vmem>>, vector<32x128xbf16>
    %c0_1 = arith.constant 0 : index
    %c0_2 = arith.constant 0 : index
    %1 = vector.load %arg2[%c0_1, %c0_2] : memref<128x128xbf16, #tpu.memory_space<vmem>>, vector<128x128xbf16>
    %cst = arith.constant dense<0.000000e+00> : vector<32x128xf32>
    %2 = tpu.matmul %0, %1, %cst {dimension_numbers = #tpu.dot_dimension_numbers<[1], [0], [0], [1], [0, 0, 1, 1], [], []>} : vector<32x128xbf16>, vector<128x128xbf16>, vector<32x128xf32> -> vector<32x128xf32>
    %c0_3 = arith.constant 0 : index
    %c0_4 = arith.constant 0 : index
    %3 = vector.load %arg3[%c0_3, %c0_4] : memref<1x128xf32, #tpu.memory_space<vmem>>, vector<1x128xf32>
    %4 = vector.broadcast %3 : vector<1x128xf32> to vector<32x128xf32>
    %5 = arith.addf %2, %4 : vector<32x128xf32>
    %c0_5 = arith.constant 0 : index
    %c0_6 = arith.constant 0 : index
    %6 = vector.load %arg4[%c0_5, %c0_6] : memref<32x128xf32, #tpu.memory_space<vmem>>, vector<32x128xf32>
    tpu.vector_store %arg4[%c0_5, %c0_6], %5 {strides = array<i32>} : memref<32x128xf32, #tpu.memory_space<vmem>>, vector<32x128xf32>,
    return
  }
  func.func @transform_0(%arg0: i32) -> (i32, i32) {
    %c0_i32 = arith.constant 0 : i32
    %c0_i32_0 = arith.constant 0 : i32
    return %arg0, %c0_i32 : i32, i32
  }
  func.func @transform_1(%arg0: i32) -> (i32, i32) {
    %c0_i32 = arith.constant 0 : i32
    %c0_i32_0 = arith.constant 0 : i32
    %c0_i32_1 = arith.constant 0 : i32
    return %c0_i32, %c0_i32_0 : i32, i32
  }
  func.func @transform_2(%arg0: i32) -> (i32, i32) {
    %c0_i32 = arith.constant 0 : i32
    %c0_i32_0 = arith.constant 0 : i32
    %c0_i32_1 = arith.constant 0 : i32
    return %c0_i32, %c0_i32_0 : i32, i32
  }
  func.func @transform_3(%arg0: i32) -> (i32, i32) {
    %c0_i32 = arith.constant 0 : i32
    %c0_i32_0 = arith.constant 0 : i32
    return %arg0, %c0_i32 : i32, i32
  }
}

</mosaic_0001>

<bundles_post_ra>
// kernel: patch_embed.1
= control target key start
LH: loop header
LB: loop body
LE: loop exit
PB: predicated region body
PF: predicated region fallthrough
CT: control target
= control target key end

     0   :  { %s318_s0 = inlined_call_operand.vmem [shape: bf16[32,128], index: 0, kind: input, shape index: {}]   ;;  %s319_s1 = inlined_call_operand.vmem [shape: bf16[128,128], index: 1, kind: input, shape index: {}]   ;;  %s320_s2 = inlined_call_operand.vmem [shape: f32[1,128], index: 2, kind: input, shape index: {}]   ;;  %s321_s3 = inlined_call_operand.hbm [shape: f32[32,128], index: 3, kind: output, shape index: {}]  }
   0x1   :  { %v216_v0 = vld [vmem:[%s319_s1] sm:$0xff]   ;;  %v217_v1 = vld [vmem:[%s319_s1 + $0x8] sm:$0xff]   ;;  %v218_v2 = vld [vmem:[%s319_s1 + $0x10] sm:$0xff]  }
   0x2   :  { %193 = vmatprep.subr.bf16.mxu0 %v216_v0  ;;  %v219_v3 = vld [vmem:[%s319_s1 + $0x18] sm:$0xff]   ;;  %v224_v4 = vld [vmem:[%s318_s0] sm:$0xff]  }
   0x3   :  { %194 = vmatpush3.bf16.msra.mxu0 %v216_v0  ;;  %209 = vmatprep.mubr.bf16.mxu0 %v224_v4 }
   0x4   :  { %195 = vmatprep.subr.bf16.mxu0 %v217_v1 }
   0x7   :  { %196 = vmatpush3.bf16.msra.mxu0 %v217_v1 }
   0x8   :  { %197 = vmatprep.subr.bf16.mxu0 %v218_v2 }
   0x9   :  { %8 = vsyncpa [#allocation3], 0  ;;  %v220_v5 = vld [vmem:[%s319_s1 + $0x20] sm:$0xff]   ;;  %v221_v6 = vld [vmem:[%s319_s1 + $0x28] sm:$0xff]   ;;  %s250_s7 = smov [#allocation2]  }
   0xa   :  { %v222_v7 = vld [vmem:[%s319_s1 + $0x30] sm:$0xff]   ;;  %v223_v8 = vld [vmem:[%s319_s1 + $0x38] sm:$0xff]   ;;  %v225_v9 = vld [vmem:[%s318_s0 + $0x8] sm:$0xff]   ;;  %s161_s8 = sshll.u32 %s250_s7, 4  ;;  %s162_s8 = int_to_ptr.vmem [resolvable:$true] %s161_s8 }
   0xb   :  { %198 = vmatpush3.bf16.msra.mxu0 %v218_v2  ;;  %v172_v10 = vld [vmem:[%s320_s2] ss:$0 sm:$0xff]  ;;  %s226_s0 = scalar_lea.vmem %s162_s8, 512  ;;  %p231_p1 = scmp.lt.s32.totalorder %s162_s8, %s162_s8 }
   0xc   :  { %199 = vmatprep.subr.bf16.mxu0 %v219_v3  ;;  %p227_p0 = scmp.ne.s32.totalorder %s162_s8, %s226_s0  ;;  %p232_p2 = scmp.lt.s32.totalorder %s226_s0, %s226_s0 }
   0xe   :  { %p233_p3 = por %p232_p2, %p231_p1 }
   0xf   :  { %200 = vmatpush3.bf16.msra.mxu0 %v219_v3 }
  0x10   :  { %201 = vmatprep.subr.bf16.mxu0 %v220_v5  ;;  %p234_p4 = pnand %p233_p3, %p227_p0 }
  0x13   :  { %202 = vmatpush3.bf16.msra.mxu0 %v220_v5 }
  0x14   :  { %203 = vmatprep.subr.bf16.mxu0 %v221_v6 }
  0x17   :  { %204 = vmatpush3.bf16.msra.mxu0 %v221_v6 }
  0x18   :  { %205 = vmatprep.subr.bf16.mxu0 %v222_v7 }
  0x1b   :  { %206 = vmatpush3.bf16.msra.mxu0 %v222_v7 }
  0x1c   :  { %207 = vmatprep.subr.bf16.mxu0 %v223_v8 }
  0x1f   :  { %208 = vmatpush3.bf16.msra.mxu0 %v223_v8 }
  0x22   :  { %210 = vmatmul.mubr.bf16.vlgmr.msra.gmra.mrb[0].mxu0 %v225_v9 }
  0xf5   :  { %v211_v11 = vpop.f32.mrb[0].mxu0 }
  0xf6   :  { %v146_v12 = vadd.f32 %v211_v11, %v172_v10  ;;  %v137_v13 = vpop.f32.mrb[1].mxu0 }
  0xf7   :  { %v138_v14 = vadd.f32 %v172_v10, %v137_v13  ;;  %v212_v15 = vpop.f32.mrb[2].mxu0 }
  0xf8   :  { %154 = vst [vmem:[#allocation2 + $0x10] sm:$0xff] %v146_v12  ;;  %v149_v16 = vadd.f32 %v212_v15, %v172_v10  ;;  %v140_v17 = vpop.f32.mrb[3].mxu0 }
  0xf9   :  { %152 = vst [vmem:[#allocation2] sm:$0xff] %v138_v14  ;;  %v141_v18 = vadd.f32 %v172_v10, %v140_v17 }
  0xfa   :  { %155 = vst [vmem:[#allocation2 + $0x18] sm:$0xff] %v149_v16 }
  0xfb   :  { %153 = vst [vmem:[#allocation2 + $0x8] sm:$0xff] %v141_v18 }
  0xfc   :  { %237 = shalt.err (!%p234_p4)
}
  0xfd   :  { %s238_s9 = scalar_lea.hbm %s321_s3, 512 }
  0xfe   :  { %p239_p5 = scmp.ne.s32.totalorder %s321_s3, %s238_s9  ;;  %p242_p6 = scmp.lt.u32.totalorder %s238_s9, %s321_s3 }
 0x100   :  { %p244_p7 = pnand %p242_p6, %p239_p5 }
 0x102   :  { %247 = shalt.err (!%p244_p7)
}
 0x103   :  { %s251_s14 = smov 128   ;;  %s252_s15 = smov 8  }
 0x104   :  { %167 = dma.vmem_to_hbm [thread:$0]  %s162_s8, 512, %s321_s3, [#allocation3], %s251_s14, %s251_s14, %s252_s15  }
 0x105   :  { %248 = dma.done.wait [#allocation3], 512  }
 0x106   :  { %249 = vsyncadd [#allocation3], 4294966784 }
 0x107   :  { %171 = vsyncpa [#allocation3], 1 }

</bundles_post_ra>
